<compile_context>
chip_gen: v6e
topology: v6e:2x2x1
jax: 0.10.0
libtpu: 0.0.40
codegen_flags: <defaults>
</compile_context>

<pallas_src>
import functools

import jax
import jax.numpy as jnp
from jax.experimental import pallas as pl
from jax.experimental.pallas import tpu as pltpu


def _conv2d_kernel(x_ref, w_ref, b_ref, o_ref, *, KH, KW, W, HW, n_img):
    # x_ref: (n_img, Cin, H*W)    flattened images of this grid step, channel-major
    # w_ref: (KH*KW, Cout, Cin)   per-tap weight matrices, tap index = kh*KW + kw
    # b_ref: (Cout, 1)
    # o_ref: (n_img, Cout, H*W)   full-size outputs; invalid border columns are junk
    b = b_ref[...]                                            # (Cout, 1)
    for n in range(n_img):                                    # tiny static unroll
        x = x_ref[n]                                          # (Cin, H*W)
        acc = None
        for kh in range(KH):
            for kw in range(KW):
                s = kh * W + kw
                # Lane rotation (XLU): rolled[:, p] = x[:, (p + s) mod H*W].
                xs = x if s == 0 else pltpu.roll(x, HW - s, axis=1)
                part = jnp.dot(w_ref[kh * KW + kw], xs,       # (Cout,Cin)@(Cin,H*W)
                               preferred_element_type=jnp.float32)
                acc = part if acc is None else acc + part
        # Lane-dense store: last dim H*W is a multiple of 128.
        o_ref[n] = (acc + b).astype(o_ref.dtype)


def prepare_conv_params(w_oihw, bias):
    """One-time parameter repack (hoisted out of the per-call forward path)."""
    Cout, Cin, KH, KW = w_oihw.shape
    # (Cout, Cin, KH, KW) -> (KH, KW, Cout, Cin) -> (KH*KW, Cout, Cin)
    w_taps = jnp.transpose(w_oihw, (2, 3, 0, 1)).reshape(KH * KW, Cout, Cin)
    b2 = bias.reshape(Cout, 1)
    return w_taps, b2


def conv2d_m2(x_nchw, w_taps, b2, *, images_per_step=None):
    """stride=1, padding=0 ("valid") conv.  x: (N,Cin,H,W), w_taps: (KH*KW,Cout,Cin)."""
    N, Cin, H, W = x_nchw.shape
    KHKW, Cout, _ = w_taps.shape
    KH = KW = int(round(KHKW ** 0.5))
    assert KH * KW == KHKW
    Ho, Wo = H - KH + 1, W - KW + 1
    HW = H * W

    # Collapse the batch loop: small batches run in a single grid step (best on the
    # single-TC v5e/v6e).  On v7x with larger batches, pass images_per_step = N // 2 to
    # keep both TensorCores busy via the "parallel" grid axis.
    if images_per_step is None:
        images_per_step = N if N <= 4 else 1
    assert N % images_per_step == 0, "images_per_step must divide the batch"
    n_blocks = N // images_per_step

    # Free, contiguous reshape (NCHW is already channel-major per image).
    x2 = x_nchw.reshape(N, Cin, HW)

    kernel = functools.partial(
        _conv2d_kernel, KH=KH, KW=KW, W=W, HW=HW, n_img=images_per_step)

    y_full = pl.pallas_call(
        kernel,
        out_shape=jax.ShapeDtypeStruct((N, Cout, HW), x_nchw.dtype),
        grid=(n_blocks,),
        in_specs=[
            # images_per_step images per grid step.
            pl.BlockSpec((images_per_step, Cin, HW), lambda g: (g, 0, 0)),
            # Weights / bias resident across the grid.
            pl.BlockSpec((KHKW, Cout, Cin), lambda g: (0, 0, 0)),
            pl.BlockSpec((Cout, 1), lambda g: (0, 0)),
        ],
        out_specs=pl.BlockSpec((images_per_step, Cout, HW), lambda g: (g, 0, 0)),
        compiler_params=pltpu.CompilerParams(dimension_semantics=("parallel",)),
    )(x2, w_taps, b2)

    # (N, Cout, H*W) -> (N, Cout, H, W), then drop the junk wrap-around border to get
    # the valid-conv output (N, Cout, Ho, Wo).  Single cheap XLA slice inside the jit;
    # consumers that can fuse the slice may take y_full directly.
    return y_full.reshape(N, Cout, H, W)[:, :, :Ho, :Wo]


def m2_forward(x_nchw, w_taps, b2):
    """Mirrors M2.forward: x -> Conv2d(3, 6, 3, stride=1, padding=0)(x). NCHW in/out."""
    return conv2d_m2(x_nchw, w_taps, b2)


if __name__ == "__main__":
    key = jax.random.PRNGKey(0)
    kx, kw, kb = jax.random.split(key, 3)

    # Input consistent with Conv2d(3, 6, 3): small batch, 3 channels, 16x16 spatial.
    N, Cin, H, W = 2, 3, 16, 16
    Cout, KH, KW = 6, 3, 3

    x = jax.random.normal(kx, (N, Cin, H, W), dtype=jnp.float32)

    # Deterministic parameter init (PyTorch-style uniform bound 1/sqrt(fan_in)).
    fan_in = Cin * KH * KW
    bound = 1.0 / (fan_in ** 0.5)
    w = jax.random.uniform(kw, (Cout, Cin, KH, KW), jnp.float32, -bound, bound)
    b = jax.random.uniform(kb, (Cout,), jnp.float32, -bound, bound)

    # One-time parameter repack (parameter-load time, not per forward call).
    w_taps, b2 = prepare_conv_params(w, b)

    y = jax.jit(m2_forward)(x, w_taps, b2)
    y = jax.block_until_ready(y)
    assert y.shape == (N, Cout, H - KH + 1, W - KW + 1), y.shape

    # Sanity check against XLA's conv.
    y_ref = jax.lax.conv_general_dilated(
        x, w, window_strides=(1, 1), padding="VALID",
        dimension_numbers=("NCHW", "OIHW", "NCHW"),
    ) + b.reshape(1, Cout, 1, 1)
    assert jnp.allclose(y, y_ref, atol=1e-5, rtol=1e-5)

    print("KERNEL_OK")
</pallas_src>

<mosaic_0001>
module attributes {stable_mosaic.version = 11 : i64} {
  func.func @_conv2d_kernel(%arg0: i32, %arg1: memref<2x3x256xf32, #tpu.memory_space<vmem>>, %arg2: memref<9x6x3xf32, #tpu.memory_space<vmem>>, %arg3: memref<6x1xf32, #tpu.memory_space<vmem>>, %arg4: memref<2x6x256xf32, #tpu.memory_space<vmem>>) attributes {dimension_semantics = [#tpu.dimension_semantics<parallel>], iteration_bounds = array<i64: 1>, scalar_prefetch = 0 : i64, scratch_operands = 0 : i64, tpu.core_type = #tpu.core_type<tc>, window_params = [{transform_indices = @transform_0, window_bounds = array<i64: 2, 3, 256>}, {pipeline_mode = #tpu.pipeline_mode<synchronous>, transform_indices = @transform_1, window_bounds = array<i64: 9, 6, 3>}, {pipeline_mode = #tpu.pipeline_mode<synchronous>, transform_indices = @transform_2, window_bounds = array<i64: 6, 1>}, {transform_indices = @transform_3, window_bounds = array<i64: 2, 6, 256>}]} {
    %c0 = arith.constant 0 : index
    %c0_0 = arith.constant 0 : index
    %0 = vector.load %arg3[%c0, %c0_0] : memref<6x1xf32, #tpu.memory_space<vmem>>, vector<6x1xf32>
    %c0_1 = arith.constant 0 : index
    %c0_2 = arith.constant 0 : index
    %c0_3 = arith.constant 0 : index
    %1 = vector.load %arg1[%c0_1, %c0_2, %c0_3] : memref<2x3x256xf32, #tpu.memory_space<vmem>>, vector<1x3x256xf32>
    %2 = vector.shape_cast %1 : vector<1x3x256xf32> to vector<3x256xf32>
    %c0_4 = arith.constant 0 : index
    %c0_5 = arith.constant 0 : index
    %c0_6 = arith.constant 0 : index
    %3 = vector.load %arg2[%c0_4, %c0_5, %c0_6] : memref<9x6x3xf32, #tpu.memory_space<vmem>>, vector<1x6x3xf32>
    %4 = vector.shape_cast %3 : vector<1x6x3xf32> to vector<6x3xf32>
    %cst = arith.constant dense<0.000000e+00> : vector<6x256xf32>
    %5 = tpu.matmul %4, %2, %cst {dimension_numbers = #tpu.dot_dimension_numbers<[1], [0], [0], [1], [0, 0, 1, 1], [], []>} : vector<6x3xf32>, vector<3x256xf32>, vector<6x256xf32> -> vector<6x256xf32>
    %c255_i32 = arith.constant 255 : i32
    %6 = tpu.dynamic_rotate %2 by %c255_i32 dim 1 : vector<3x256xf32>, i32 -> vector<3x256xf32>
    %c1 = arith.constant 1 : index
    %c0_7 = arith.constant 0 : index
    %c0_8 = arith.constant 0 : index
    %7 = vector.load %arg2[%c1, %c0_7, %c0_8] : memref<9x6x3xf32, #tpu.memory_space<vmem>>, vector<1x6x3xf32>
    %8 = vector.shape_cast %7 : vector<1x6x3xf32> to vector<6x3xf32>
    %cst_9 = arith.constant dense<0.000000e+00> : vector<6x256xf32>
    %9 = tpu.matmul %8, %6, %cst_9 {dimension_numbers = #tpu.dot_dimension_numbers<[1], [0], [0], [1], [0, 0, 1, 1], [], []>} : vector<6x3xf32>, vector<3x256xf32>, vector<6x256xf32> -> vector<6x256xf32>
    %10 = arith.addf %5, %9 : vector<6x256xf32>
    %c254_i32 = arith.constant 254 : i32
    %11 = tpu.dynamic_rotate %2 by %c254_i32 dim 1 : vector<3x256xf32>, i32 -> vector<3x256xf32>
    %c2 = arith.constant 2 : index
    %c0_10 = arith.constant 0 : index
    %c0_11 = arith.constant 0 : index
    %12 = vector.load %arg2[%c2, %c0_10, %c0_11] : memref<9x6x3xf32, #tpu.memory_space<vmem>>, vector<1x6x3xf32>
    %13 = vector.shape_cast %12 : vector<1x6x3xf32> to vector<6x3xf32>
    %cst_12 = arith.constant dense<0.000000e+00> : vector<6x256xf32>
    %14 = tpu.matmul %13, %11, %cst_12 {dimension_numbers = #tpu.dot_dimension_numbers<[1], [0], [0], [1], [0, 0, 1, 1], [], []>} : vector<6x3xf32>, vector<3x256xf32>, vector<6x256xf32> -> vector<6x256xf32>
    %15 = arith.addf %10, %14 : vector<6x256xf32>
    %c240_i32 = arith.constant 240 : i32
    %16 = tpu.dynamic_rotate %2 by %c240_i32 dim 1 : vector<3x256xf32>, i32 -> vector<3x256xf32>
    %c3 = arith.constant 3 : index
    %c0_13 = arith.constant 0 : index
    %c0_14 = arith.constant 0 : index
    %17 = vector.load %arg2[%c3, %c0_13, %c0_14] : memref<9x6x3xf32, #tpu.memory_space<vmem>>, vector<1x6x3xf32>
    %18 = vector.shape_cast %17 : vector<1x6x3xf32> to vector<6x3xf32>
    %cst_15 = arith.constant dense<0.000000e+00> : vector<6x256xf32>
    %19 = tpu.matmul %18, %16, %cst_15 {dimension_numbers = #tpu.dot_dimension_numbers<[1], [0], [0], [1], [0, 0, 1, 1], [], []>} : vector<6x3xf32>, vector<3x256xf32>, vector<6x256xf32> -> vector<6x256xf32>
    %20 = arith.addf %15, %19 : vector<6x256xf32>
    %c239_i32 = arith.constant 239 : i32
    %21 = tpu.dynamic_rotate %2 by %c239_i32 dim 1 : vector<3x256xf32>, i32 -> vector<3x256xf32>
    %c4 = arith.constant 4 : index
    %c0_16 = arith.constant 0 : index
    %c0_17 = arith.constant 0 : index
    %22 = vector.load %arg2[%c4, %c0_16, %c0_17] : memref<9x6x3xf32, #tpu.memory_space<vmem>>, vector<1x6x3xf32>
    %23 = vector.shape_cast %22 : vector<1x6x3xf32> to vector<6x3xf32>
    %cst_18 = arith.constant dense<0.000000e+00> : vector<6x256xf32>
    %24 = tpu.matmul %23, %21, %cst_18 {dimension_numbers = #tpu.dot_dimension_numbers<[1], [0], [0], [1], [0, 0, 1, 1], [], []>} : vector<6x3xf32>, vector<3x256xf32>, vector<6x256xf32> -> vector<6x256xf32>
    %25 = arith.addf %20, %24 : vector<6x256xf32>
    %c238_i32 = arith.constant 238 : i32
    %26 = tpu.dynamic_rotate %2 by %c238_i32 dim 1 : vector<3x256xf32>, i32 -> vector<3x256xf32>
    %c5 = arith.constant 5 : index
    %c0_19 = arith.constant 0 : index
    %c0_20 = arith.constant 0 : index
    %27 = vector.load %arg2[%c5, %c0_19, %c0_20] : memref<9x6x3xf32, #tpu.memory_space<vmem>>, vector<1x6x3xf32>
    %28 = vector.shape_cast %27 : vector<1x6x3xf32> to vector<6x3xf32>
    %cst_21 = arith.constant dense<0.000000e+00> : vector<6x256xf32>
    %29 = tpu.matmul %28, %26, %cst_21 {dimension_numbers = #tpu.dot_dimension_numbers<[1], [0], [0], [1], [0, 0, 1, 1], [], []>} : vector<6x3xf32>, vector<3x256xf32>, vector<6x256xf32> -> vector<6x256xf32>
    %30 = arith.addf %25, %29 : vector<6x256xf32>
    %c224_i32 = arith.constant 224 : i32
    %31 = tpu.dynamic_rotate %2 by %c224_i32 dim 1 : vector<3x256xf32>, i32 -> vector<3x256xf32>
    %c6 = arith.constant 6 : index
    %c0_22 = arith.constant 0 : index
    %c0_23 = arith.constant 0 : index
    %32 = vector.load %arg2[%c6, %c0_22, %c0_23] : memref<9x6x3xf32, #tpu.memory_space<vmem>>, vector<1x6x3xf32>
    %33 = vector.shape_cast %32 : vector<1x6x3xf32> to vector<6x3xf32>
    %cst_24 = arith.constant dense<0.000000e+00> : vector<6x256xf32>
    %34 = tpu.matmul %33, %31, %cst_24 {dimension_numbers = #tpu.dot_dimension_numbers<[1], [0], [0], [1], [0, 0, 1, 1], [], []>} : vector<6x3xf32>, vector<3x256xf32>, vector<6x256xf32> -> vector<6x256xf32>
    %35 = arith.addf %30, %34 : vector<6x256xf32>
    %c223_i32 = arith.constant 223 : i32
    %36 = tpu.dynamic_rotate %2 by %c223_i32 dim 1 : vector<3x256xf32>, i32 -> vector<3x256xf32>
    %c7 = arith.constant 7 : index
    %c0_25 = arith.constant 0 : index
    %c0_26 = arith.constant 0 : index
    %37 = vector.load %arg2[%c7, %c0_25, %c0_26] : memref<9x6x3xf32, #tpu.memory_space<vmem>>, vector<1x6x3xf32>
    %38 = vector.shape_cast %37 : vector<1x6x3xf32> to vector<6x3xf32>
    %cst_27 = arith.constant dense<0.000000e+00> : vector<6x256xf32>
    %39 = tpu.matmul %38, %36, %cst_27 {dimension_numbers = #tpu.dot_dimension_numbers<[1], [0], [0], [1], [0, 0, 1, 1], [], []>} : vector<6x3xf32>, vector<3x256xf32>, vector<6x256xf32> -> vector<6x256xf32>
    %40 = arith.addf %35, %39 : vector<6x256xf32>
    %c222_i32 = arith.constant 222 : i32
    %41 = tpu.dynamic_rotate %2 by %c222_i32 dim 1 : vector<3x256xf32>, i32 -> vector<3x256xf32>
    %c8 = arith.constant 8 : index
    %c0_28 = arith.constant 0 : index
    %c0_29 = arith.constant 0 : index
    %42 = vector.load %arg2[%c8, %c0_28, %c0_29] : memref<9x6x3xf32, #tpu.memory_space<vmem>>, vector<1x6x3xf32>
    %43 = vector.shape_cast %42 : vector<1x6x3xf32> to vector<6x3xf32>
    %cst_30 = arith.constant dense<0.000000e+00> : vector<6x256xf32>
    %44 = tpu.matmul %43, %41, %cst_30 {dimension_numbers = #tpu.dot_dimension_numbers<[1], [0], [0], [1], [0, 0, 1, 1], [], []>} : vector<6x3xf32>, vector<3x256xf32>, vector<6x256xf32> -> vector<6x256xf32>
    %45 = arith.addf %40, %44 : vector<6x256xf32>
    %46 = vector.broadcast %0 : vector<6x1xf32> to vector<6x256xf32>
    %47 = arith.addf %45, %46 : vector<6x256xf32>
    %c0_31 = arith.constant 0 : index
    %c0_32 = arith.constant 0 : index
    %c0_33 = arith.constant 0 : index
    %48 = vector.load %arg4[%c0_31, %c0_32, %c0_33] : memref<2x6x256xf32, #tpu.memory_space<vmem>>, vector<1x6x256xf32>
    %49 = vector.shape_cast %48 : vector<1x6x256xf32> to vector<6x256xf32>
    %50 = vector.shape_cast %47 : vector<6x256xf32> to vector<1x6x256xf32>
    tpu.vector_store %arg4[%c0_31, %c0_32, %c0_33], %50 {strides = array<i32>} : memref<2x6x256xf32, #tpu.memory_space<vmem>>, vector<1x6x256xf32>,
    %c1_34 = arith.constant 1 : index
    %c0_35 = arith.constant 0 : index
    %c0_36 = arith.constant 0 : index
    %51 = vector.load %arg1[%c1_34, %c0_35, %c0_36] : memref<2x3x256xf32, #tpu.memory_space<vmem>>, vector<1x3x256xf32>
    %52 = vector.shape_cast %51 : vector<1x3x256xf32> to vector<3x256xf32>
    %c0_37 = arith.constant 0 : index
    %c0_38 = arith.constant 0 : index
    %c0_39 = arith.constant 0 : index
    %53 = vector.load %arg2[%c0_37, %c0_38, %c0_39] : memref<9x6x3xf32, #tpu.memory_space<vmem>>, vector<1x6x3xf32>
    %54 = vector.shape_cast %53 : vector<1x6x3xf32> to vector<6x3xf32>
    %cst_40 = arith.constant dense<0.000000e+00> : vector<6x256xf32>
    %55 = tpu.matmul %54, %52, %cst_40 {dimension_numbers = #tpu.dot_dimension_numbers<[1], [0], [0], [1], [0, 0, 1, 1], [], []>} : vector<6x3xf32>, vector<3x256xf32>, vector<6x256xf32> -> vector<6x256xf32>
    %c255_i32_41 = arith.constant 255 : i32
    %56 = tpu.dynamic_rotate %52 by %c255_i32_41 dim 1 : vector<3x256xf32>, i32 -> vector<3x256xf32>
    %c1_42 = arith.constant 1 : index
    %c0_43 = arith.constant 0 : index
    %c0_44 = arith.constant 0 : index
    %57 = vector.load %arg2[%c1_42, %c0_43, %c0_44] : memref<9x6x3xf32, #tpu.memory_space<vmem>>, vector<1x6x3xf32>
    %58 = vector.shape_cast %57 : vector<1x6x3xf32> to vector<6x3xf32>
    %cst_45 = arith.constant dense<0.000000e+00> : vector<6x256xf32>
    %59 = tpu.matmul %58, %56, %cst_45 {dimension_numbers = #tpu.dot_dimension_numbers<[1], [0], [0], [1], [0, 0, 1, 1], [], []>} : vector<6x3xf32>, vector<3x256xf32>, vector<6x256xf32> -> vector<6x256xf32>
    %60 = arith.addf %55, %59 : vector<6x256xf32>
    %c254_i32_46 = arith.constant 254 : i32
    %61 = tpu.dynamic_rotate %52 by %c254_i32_46 dim 1 : vector<3x256xf32>, i32 -> vector<3x256xf32>
    %c2_47 = arith.constant 2 : index
    %c0_48 = arith.constant 0 : index
    %c0_49 = arith.constant 0 : index
    %62 = vector.load %arg2[%c2_47, %c0_48, %c0_49] : memref<9x6x3xf32, #tpu.memory_space<vmem>>, vector<1x6x3xf32>
    %63 = vector.shape_cast %62 : vector<1x6x3xf32> to vector<6x3xf32>
    %cst_50 = arith.constant dense<0.000000e+00> : vector<6x256xf32>
    %64 = tpu.matmul %63, %61, %cst_50 {dimension_numbers = #tpu.dot_dimension_numbers<[1], [0], [0], [1], [0, 0, 1, 1], [], []>} : vector<6x3xf32>, vector<3x256xf32>, vector<6x256xf32> -> vector<6x256xf32>
    %65 = arith.addf %60, %64 : vector<6x256xf32>
    %c240_i32_51 = arith.constant 240 : i32
    %66 = tpu.dynamic_rotate %52 by %c240_i32_51 dim 1 : vector<3x256xf32>, i32 -> vector<3x256xf32>
    %c3_52 = arith.constant 3 : index
    %c0_53 = arith.constant 0 : index
    %c0_54 = arith.constant 0 : index
    %67 = vector.load %arg2[%c3_52, %c0_53, %c0_54] : memref<9x6x3xf32, #tpu.memory_space<vmem>>, vector<1x6x3xf32>
    %68 = vector.shape_cast %67 : vector<1x6x3xf32> to vector<6x3xf32>
    %cst_55 = arith.constant dense<0.000000e+00> : vector<6x256xf32>
    %69 = tpu.matmul %68, %66, %cst_55 {dimension_numbers = #tpu.dot_dimension_numbers<[1], [0], [0], [1], [0, 0, 1, 1], [], []>} : vector<6x3xf32>, vector<3x256xf32>, vector<6x256xf32> -> vector<6x256xf32>
    %70 = arith.addf %65, %69 : vector<6x256xf32>
    %c239_i32_56 = arith.constant 239 : i32
    %71 = tpu.dynamic_rotate %52 by %c239_i32_56 dim 1 : vector<3x256xf32>, i32 -> vector<3x256xf32>
    %c4_57 = arith.constant 4 : index
    %c0_58 = arith.constant 0 : index
    %c0_59 = arith.constant 0 : index
    %72 = vector.load %arg2[%c4_57, %c0_58, %c0_59] : memref<9x6x3xf32, #tpu.memory_space<vmem>>, vector<1x6x3xf32>
    %73 = vector.shape_cast %72 : vector<1x6x3xf32> to vector<6x3xf32>
    %cst_60 = arith.constant dense<0.000000e+00> : vector<6x256xf32>
    %74 = tpu.matmul %73, %71, %cst_60 {dimension_numbers = #tpu.dot_dimension_numbers<[1], [0], [0], [1], [0, 0, 1, 1], [], []>} : vector<6x3xf32>, vector<3x256xf32>, vector<6x256xf32> -> vector<6x256xf32>
    %75 = arith.addf %70, %74 : vector<6x256xf32>
    %c238_i32_61 = arith.constant 238 : i32
    %76 = tpu.dynamic_rotate %52 by %c238_i32_61 dim 1 : vector<3x256xf32>, i32 -> vector<3x256xf32>
    %c5_62 = arith.constant 5 : index
    %c0_63 = arith.constant 0 : index
    %c0_64 = arith.constant 0 : index
    %77 = vector.load %arg2[%c5_62, %c0_63, %c0_64] : memref<9x6x3xf32, #tpu.memory_space<vmem>>, vector<1x6x3xf32>
    %78 = vector.shape_cast %77 : vector<1x6x3xf32> to vector<6x3xf32>
    %cst_65 = arith.constant dense<0.000000e+00> : vector<6x256xf32>
    %79 = tpu.matmul %78, %76, %cst_65 {dimension_numbers = #tpu.dot_dimension_numbers<[1], [0], [0], [1], [0, 0, 1, 1], [], []>} : vector<6x3xf32>, vector<3x256xf32>, vector<6x256xf32> -> vector<6x256xf32>
    %80 = arith.addf %75, %79 : vector<6x256xf32>
    %c224_i32_66 = arith.constant 224 : i32
    %81 = tpu.dynamic_rotate %52 by %c224_i32_66 dim 1 : vector<3x256xf32>, i32 -> vector<3x256xf32>
    %c6_67 = arith.constant 6 : index
    %c0_68 = arith.constant 0 : index
    %c0_69 = arith.constant 0 : index
    %82 = vector.load %arg2[%c6_67, %c0_68, %c0_69] : memref<9x6x3xf32, #tpu.memory_space<vmem>>, vector<1x6x3xf32>
    %83 = vector.shape_cast %82 : vector<1x6x3xf32> to vector<6x3xf32>
    %cst_70 = arith.constant dense<0.000000e+00> : vector<6x256xf32>
    %84 = tpu.matmul %83, %81, %cst_70 {dimension_numbers = #tpu.dot_dimension_numbers<[1], [0], [0], [1], [0, 0, 1, 1], [], []>} : vector<6x3xf32>, vector<3x256xf32>, vector<6x256xf32> -> vector<6x256xf32>
    %85 = arith.addf %80, %84 : vector<6x256xf32>
    %c223_i32_71 = arith.constant 223 : i32
    %86 = tpu.dynamic_rotate %52 by %c223_i32_71 dim 1 : vector<3x256xf32>, i32 -> vector<3x256xf32>
    %c7_72 = arith.constant 7 : index
    %c0_73 = arith.constant 0 : index
    %c0_74 = arith.constant 0 : index
    %87 = vector.load %arg2[%c7_72, %c0_73, %c0_74] : memref<9x6x3xf32, #tpu.memory_space<vmem>>, vector<1x6x3xf32>
    %88 = vector.shape_cast %87 : vector<1x6x3xf32> to vector<6x3xf32>
    %cst_75 = arith.constant dense<0.000000e+00> : vector<6x256xf32>
    %89 = tpu.matmul %88, %86, %cst_75 {dimension_numbers = #tpu.dot_dimension_numbers<[1], [0], [0], [1], [0, 0, 1, 1], [], []>} : vector<6x3xf32>, vector<3x256xf32>, vector<6x256xf32> -> vector<6x256xf32>
    %90 = arith.addf %85, %89 : vector<6x256xf32>
    %c222_i32_76 = arith.constant 222 : i32
    %91 = tpu.dynamic_rotate %52 by %c222_i32_76 dim 1 : vector<3x256xf32>, i32 -> vector<3x256xf32>
    %c8_77 = arith.constant 8 : index
    %c0_78 = arith.constant 0 : index
    %c0_79 = arith.constant 0 : index
    %92 = vector.load %arg2[%c8_77, %c0_78, %c0_79] : memref<9x6x3xf32, #tpu.memory_space<vmem>>, vector<1x6x3xf32>
    %93 = vector.shape_cast %92 : vector<1x6x3xf32> to vector<6x3xf32>
    %cst_80 = arith.constant dense<0.000000e+00> : vector<6x256xf32>
    %94 = tpu.matmul %93, %91, %cst_80 {dimension_numbers = #tpu.dot_dimension_numbers<[1], [0], [0], [1], [0, 0, 1, 1], [], []>} : vector<6x3xf32>, vector<3x256xf32>, vector<6x256xf32> -> vector<6x256xf32>
    %95 = arith.addf %90, %94 : vector<6x256xf32>
    %96 = vector.broadcast %0 : vector<6x1xf32> to vector<6x256xf32>
    %97 = arith.addf %95, %96 : vector<6x256xf32>
    %c1_81 = arith.constant 1 : index
    %c0_82 = arith.constant 0 : index
    %c0_83 = arith.constant 0 : index
    %98 = vector.load %arg4[%c1_81, %c0_82, %c0_83] : memref<2x6x256xf32, #tpu.memory_space<vmem>>, vector<1x6x256xf32>
    %99 = vector.shape_cast %98 : vector<1x6x256xf32> to vector<6x256xf32>
    %100 = vector.shape_cast %97 : vector<6x256xf32> to vector<1x6x256xf32>
    tpu.vector_store %arg4[%c1_81, %c0_82, %c0_83], %100 {strides = array<i32>} : memref<2x6x256xf32, #tpu.memory_space<vmem>>, vector<1x6x256xf32>,
    return
  }
  func.func @transform_0(%arg0: i32) -> (i32, i32, i32) {
    %c0_i32 = arith.constant 0 : i32
    %c0_i32_0 = arith.constant 0 : i32
    %c0_i32_1 = arith.constant 0 : i32
    return %arg0, %c0_i32, %c0_i32_0 : i32, i32, i32
  }
  func.func @transform_1(%arg0: i32) -> (i32, i32, i32) {
    %c0_i32 = arith.constant 0 : i32
    %c0_i32_0 = arith.constant 0 : i32
    %c0_i32_1 = arith.constant 0 : i32
    %c0_i32_2 = arith.constant 0 : i32
    return %c0_i32, %c0_i32_0, %c0_i32_1 : i32, i32, i32
  }
  func.func @transform_2(%arg0: i32) -> (i32, i32) {
    %c0_i32 = arith.constant 0 : i32
    %c0_i32_0 = arith.constant 0 : i32
    %c0_i32_1 = arith.constant 0 : i32
    return %c0_i32, %c0_i32_0 : i32, i32
  }
  func.func @transform_3(%arg0: i32) -> (i32, i32, i32) {
    %c0_i32 = arith.constant 0 : i32
    %c0_i32_0 = arith.constant 0 : i32
    %c0_i32_1 = arith.constant 0 : i32
    return %arg0, %c0_i32, %c0_i32_0 : i32, i32, i32
  }
}

</mosaic_0001>

<bundles_post_ra>
// kernel: m2_forward.1
= control target key start
LH: loop header
LB: loop body
LE: loop exit
PB: predicated region body
PF: predicated region fallthrough
CT: control target
= control target key end

     0   :  { %v1726_v1 = vmov 0.0   ;;  %s1727_s14 = smov 126   ;;  %s1728_s15 = smov 127   ;;  %vm35_vm0 = vcmask 1042432   ;;  %vm31_vm1 = vcmask 23552   ;;  %v1735_v6 = vmov 0   ;;  %s2009_s0 = inlined_call_operand.vmem [shape: f32[2,3,256], index: 0, kind: input, shape index: {}]   ;;  %s2010_s1 = inlined_call_operand.vmem [shape: f32[9,6,3], index: 1, kind: input, shape index: {}]   ;;  %s2011_s2 = inlined_call_operand.vmem [shape: f32[6,1], index: 2, kind: input, shape index: {}]   ;;  %s2012_s3 = inlined_call_operand.vmem [shape: f32[2,6,256], index: 3, kind: output, shape index: {}]  }
   0x1   :  { %v15_v0 = vld [vmem:[%s2009_s0] sm:$0x77]  ;;  %106 = vmatprep.mubr.f32.mxu0 %v1726_v1  ;;  %184 = vmatprep.mubr.f32.mxu1 %v1726_v1  ;;  %s1729_s18 = smov 112   ;;  %s1730_s19 = smov 111   ;;  %v1775_v4 = vld [vmem:[%s2009_s0 + $0x8] sm:$0x77]  ;;  %v24_v8 = vlaneseq }
   0x2   :  { %191 = vrot.lane.b32.xlu1 %v15_v0, %s1727_s14  ;;  %20 = vrot.lane.b32.xlu0 %v15_v0, %s1728_s15  ;;  %v18_v2 = vcombine.high %v15_v0, %v15_v0  ;;  %v16_v3 = vld [vmem:[%s2010_s1] sm:$0x3f]  ;;  %s1731_s20 = smov 110   ;;  %s1732_s21 = smov 96   ;;  %v1779_v5 = vcombine.high %v1775_v4, %v1775_v4  ;;  %v1640_v16 = vld [vmem:[%s2010_s1 + $0x8] sm:$0x3f] }
   0x3   :  { %s1733_s22 = smov 95   ;;  %s1734_s25 = smov 94   ;;  %1723 = vset.pattern.permute.xlu0 %v1735_v6  ;;  %v14_v7 = vld [vmem:[%s2011_s2] sm:$0x3f]  ;;  %v1804_v9 = vand.u32 127, %v24_v8 }
   0x4   :  { %1644 = vmatprep.subr.msk.mxu1 %vm35_vm0, %v18_v2  ;;  %v1647_v23 = vld [vmem:[%s2010_s1 + $0x10] sm:$0x3f]  ;;  %v1651_v24 = vld [vmem:[%s2010_s1 + $0x18] sm:$0x3f]  ;;  %v1655_v29 = vld [vmem:[%s2010_s1 + $0x20] sm:$0x3f] }
   0x5   :  { %1645 = vmatpush1.msk.msra.mxu1 %vm35_vm0, %v15_v0  ;;  %vm26_vm2 = vcmp.lt.s32.totalorder %v1804_v9, 127  ;;  %vm195_vm3 = vcmp.lt.s32.totalorder %v1804_v9, 126  ;;  %vm286_vm4 = vcmp.lt.s32.totalorder %v1804_v9, 112  ;;  %vm377_vm5 = vcmp.lt.s32.totalorder %v1804_v9, 111  ;;  %v1659_v34 = vld [vmem:[%s2010_s1 + $0x28] sm:$0x3f] }
   0x6   :  { %193 = vrot.lane.b32.xlu1 %v18_v2, %s1727_s14  ;;  %22 = vrot.lane.b32.xlu0 %v18_v2, %s1728_s15  ;;  %vm468_vm6 = vcmp.lt.s32.totalorder %v1804_v9, 110  ;;  %vm559_vm7 = vcmp.lt.s32.totalorder %v1804_v9, 96  ;;  %v1663_v39 = vld [vmem:[%s2010_s1 + $0x30] sm:$0x3f]  ;;  %vm650_vm8 = vcmp.lt.s32.totalorder %v1804_v9, 95  ;;  %vm741_vm9 = vcmp.lt.s32.totalorder %v1804_v9, 94 }
   0x7   :  { %1646 = vmatmul.mubr.msk.f32.vlgmr.msra.gmra.mxu1 %vm31_vm1, %v16_v3  ;;  %v1667_v44 = vld [vmem:[%s2010_s1 + $0x38] sm:$0x3f]  ;;  %v1671_v49 = vld [vmem:[%s2010_s1 + $0x40] sm:$0x3f]  ;;  %v1676_v54 = vld [vmem:[%s2010_s1 + $0x8] sm:$0x3f] }
   0x8   :  { %364 = vmatprep.mubr.f32.mxu1 %v1726_v1  ;;  %v839_v55 = vld [vmem:[%s2010_s1] sm:$0x3f]  ;;  %v1683_v60 = vld [vmem:[%s2010_s1 + $0x10] sm:$0x3f] }
   0xa   :  { %284 = vrot.lane.b32.xlu1 %v18_v2, %s1729_s18  ;;  %282 = vrot.lane.b32.xlu0 %v15_v0, %s1729_s18 }
   0xe   :  { %375 = vrot.lane.b32.xlu1 %v18_v2, %s1730_s19  ;;  %373 = vrot.lane.b32.xlu0 %v15_v0, %s1730_s19 }
  0x12   :  { %466 = vrot.lane.b32.xlu1 %v18_v2, %s1731_s20  ;;  %464 = vrot.lane.b32.xlu0 %v15_v0, %s1731_s20 }
  0x16   :  { %557 = vrot.lane.b32.xlu1 %v18_v2, %s1732_s21  ;;  %555 = vrot.lane.b32.xlu0 %v15_v0, %s1732_s21 }
  0x1a   :  { %648 = vrot.lane.b32.xlu1 %v18_v2, %s1733_s22  ;;  %646 = vrot.lane.b32.xlu0 %v15_v0, %s1733_s22 }
  0x1e   :  { %739 = vrot.lane.b32.xlu1 %v18_v2, %s1734_s25  ;;  %737 = vrot.lane.b32.xlu0 %v15_v0, %s1734_s25  ;;  %v1687_v2 = vld [vmem:[%s2010_s1 + $0x18] sm:$0x3f] }
  0x22   :  { %845 = vrot.lane.b32.xlu1 %v1779_v5, %s1728_s15  ;;  %843 = vrot.lane.b32.xlu0 %v1775_v4, %s1728_s15 }
  0x26   :  { %1010 = vrot.lane.b32.xlu1 %v1779_v5, %s1727_s14  ;;  %1008 = vrot.lane.b32.xlu0 %v1775_v4, %s1727_s14 }
  0x2a   :  { %1099 = vrot.lane.b32.xlu1 %v1779_v5, %s1729_s18  ;;  %1097 = vrot.lane.b32.xlu0 %v1775_v4, %s1729_s18 }
  0x2e   :  { %1188 = vrot.lane.b32.xlu1 %v1779_v5, %s1730_s19  ;;  %1186 = vrot.lane.b32.xlu0 %v1775_v4, %s1730_s19 }
  0x32   :  { %1277 = vrot.lane.b32.xlu1 %v1779_v5, %s1731_s20  ;;  %1275 = vrot.lane.b32.xlu0 %v1775_v4, %s1731_s20 }
  0x36   :  { %1366 = vrot.lane.b32.xlu1 %v1779_v5, %s1732_s21  ;;  %1364 = vrot.lane.b32.xlu0 %v1775_v4, %s1732_s21 }
  0x3a   :  { %1455 = vrot.lane.b32.xlu1 %v1779_v5, %s1733_s22  ;;  %1453 = vrot.lane.b32.xlu0 %v1775_v4, %s1733_s22 }
  0x3e   :  { %1544 = vrot.lane.b32.xlu1 %v1779_v5, %s1734_s25  ;;  %1542 = vrot.lane.b32.xlu0 %v1775_v4, %s1734_s25 }
  0x42   :  { %830 = vperm.xlu0 %1723, %v14_v7   ;;  %v1691_v7 = vld [vmem:[%s2010_s1 + $0x20] sm:$0x3f] }
  0x74   :  { %v192_v10 = vpop.permute.xlu1 %191  ;;  %v21_v11 = vpop.permute.xlu0 %20 }
  0x78   :  { %v194_v12 = vpop.permute.xlu1 %193  ;;  %v23_v13 = vpop.permute.xlu0 %22 }
  0x79   :  { %v28_v14 = vsel %vm26_vm2, %v23_v13, %v21_v11  ;;  %v27_v15 = vsel %vm26_vm2, %v21_v11, %v23_v13  ;;  %v197_v17 = vsel %vm195_vm3, %v194_v12, %v192_v10  ;;  %v196_v18 = vsel %vm195_vm3, %v192_v10, %v194_v12  ;;  %v1695_v13 = vld [vmem:[%s2010_s1 + $0x28] sm:$0x3f] }
  0x7a   :  { %1641 = vmatprep.subr.msk.mxu0 %vm35_vm0, %v28_v14 }
  0x7b   :  { %1642 = vmatpush1.msk.msra.mxu0 %vm35_vm0, %v27_v15 }
  0x7c   :  { %v285_v19 = vpop.permute.xlu1 %284  ;;  %1648 = vmatprep.subr.msk.mxu0 %vm35_vm0, %v197_v17  ;;  %v283_v20 = vpop.permute.xlu0 %282  ;;  %1643 = vmatmul.mubr.msk.f32.vlgmr.msra.gmra.mxu0 %vm31_vm1, %v1640_v16 }
  0x7d   :  { %v287_v21 = vsel %vm286_vm4, %v283_v20, %v285_v19  ;;  %v288_v22 = vsel %vm286_vm4, %v285_v19, %v283_v20  ;;  %1649 = vmatpush1.msk.msra.mxu0 %vm35_vm0, %v196_v18  ;;  %273 = vmatprep.mubr.f32.mxu0 %v1726_v1  ;;  %v1699_v18 = vld [vmem:[%s2010_s1 + $0x30] sm:$0x3f] }
  0x7e   :  { %1652 = vmatprep.subr.msk.mxu1 %vm35_vm0, %v288_v22 }
  0x7f   :  { %1653 = vmatpush1.msk.msra.mxu1 %vm35_vm0, %v287_v21 }
  0x80   :  { %v376_v25 = vpop.permute.xlu1 %375  ;;  %v374_v26 = vpop.permute.xlu0 %373  ;;  %1650 = vmatmul.mubr.msk.f32.vlgmr.msra.gmra.mxu0 %vm31_vm1, %v1647_v23  ;;  %1654 = vmatmul.mubr.msk.f32.vlgmr.msra.gmra.mxu1 %vm31_vm1, %v1651_v24  ;;  %v1703_v23 = vld [vmem:[%s2010_s1 + $0x38] sm:$0x3f] }
  0x81   :  { %v378_v27 = vsel %vm377_vm5, %v374_v26, %v376_v25  ;;  %v379_v28 = vsel %vm377_vm5, %v376_v25, %v374_v26  ;;  %455 = vmatprep.mubr.f32.mxu0 %v1726_v1  ;;  %546 = vmatprep.mubr.f32.mxu1 %v1726_v1 }
  0x82   :  { %1656 = vmatprep.subr.msk.mxu0 %vm35_vm0, %v379_v28  ;;  %v1707_v28 = vld [vmem:[%s2010_s1 + $0x40] sm:$0x3f] }
  0x83   :  { %1657 = vmatpush1.msk.msra.mxu0 %vm35_vm0, %v378_v27 }
  0x84   :  { %v467_v30 = vpop.permute.xlu1 %466  ;;  %v465_v31 = vpop.permute.xlu0 %464  ;;  %1658 = vmatmul.mubr.msk.f32.vlgmr.msra.gmra.mxu0 %vm31_vm1, %v1655_v29 }
  0x85   :  { %v469_v32 = vsel %vm468_vm6, %v465_v31, %v467_v30  ;;  %v470_v33 = vsel %vm468_vm6, %v467_v30, %v465_v31  ;;  %637 = vmatprep.mubr.f32.mxu0 %v1726_v1 }
  0x86   :  { %1660 = vmatprep.subr.msk.mxu1 %vm35_vm0, %v470_v33 }
  0x87   :  { %1661 = vmatpush1.msk.msra.mxu1 %vm35_vm0, %v469_v32 }
  0x88   :  { %v558_v35 = vpop.permute.xlu1 %557  ;;  %v556_v36 = vpop.permute.xlu0 %555  ;;  %1662 = vmatmul.mubr.msk.f32.vlgmr.msra.gmra.mxu1 %vm31_vm1, %v1659_v34 }
  0x89   :  { %v560_v37 = vsel %vm559_vm7, %v556_v36, %v558_v35  ;;  %v561_v38 = vsel %vm559_vm7, %v558_v35, %v556_v36  ;;  %728 = vmatprep.mubr.f32.mxu1 %v1726_v1 }
  0x8a   :  { %1664 = vmatprep.subr.msk.mxu0 %vm35_vm0, %v561_v38 }
  0x8b   :  { %1665 = vmatpush1.msk.msra.mxu0 %vm35_vm0, %v560_v37 }
  0x8c   :  { %v649_v40 = vpop.permute.xlu1 %648  ;;  %v647_v41 = vpop.permute.xlu0 %646  ;;  %1666 = vmatmul.mubr.msk.f32.vlgmr.msra.gmra.mxu0 %vm31_vm1, %v1663_v39 }
  0x8d   :  { %v651_v42 = vsel %vm650_vm8, %v647_v41, %v649_v40  ;;  %v652_v43 = vsel %vm650_vm8, %v649_v40, %v647_v41  ;;  %819 = vmatprep.mubr.f32.mxu0 %v1726_v1 }
  0x8e   :  { %1668 = vmatprep.subr.msk.mxu1 %vm35_vm0, %v652_v43 }
  0x8f   :  { %1669 = vmatpush1.msk.msra.mxu1 %vm35_vm0, %v651_v42 }
  0x90   :  { %v740_v45 = vpop.permute.xlu1 %739  ;;  %v738_v46 = vpop.permute.xlu0 %737  ;;  %1670 = vmatmul.mubr.msk.f32.vlgmr.msra.gmra.mxu1 %vm31_vm1, %v1667_v44 }
  0x91   :  { %v742_v47 = vsel %vm741_vm9, %v738_v46, %v740_v45  ;;  %v743_v48 = vsel %vm741_vm9, %v740_v45, %v738_v46  ;;  %923 = vmatprep.mubr.f32.mxu1 %v1726_v1 }
  0x92   :  { %1672 = vmatprep.subr.msk.mxu0 %vm35_vm0, %v743_v48 }
  0x93   :  { %1673 = vmatpush1.msk.msra.mxu0 %vm35_vm0, %v742_v47 }
  0x94   :  { %v846_v50 = vpop.permute.xlu1 %845  ;;  %v844_v51 = vpop.permute.xlu0 %843  ;;  %1674 = vmatmul.mubr.msk.f32.vlgmr.msra.gmra.mxu0 %vm31_vm1, %v1671_v49  ;;  %1680 = vmatprep.subr.msk.mxu0 %vm35_vm0, %v1779_v5 }
  0x95   :  { %v847_v52 = vsel %vm26_vm2, %v844_v51, %v846_v50  ;;  %v848_v53 = vsel %vm26_vm2, %v846_v50, %v844_v51  ;;  %1681 = vmatpush1.msk.msra.mxu0 %vm35_vm0, %v1775_v4  ;;  %1001 = vmatprep.mubr.f32.mxu0 %v1726_v1 }
  0x96   :  { %1677 = vmatprep.subr.msk.mxu1 %vm35_vm0, %v848_v53 }
  0x97   :  { %1678 = vmatpush1.msk.msra.mxu1 %vm35_vm0, %v847_v52 }
  0x98   :  { %v1011_v56 = vpop.permute.xlu1 %1010  ;;  %v1009_v57 = vpop.permute.xlu0 %1008  ;;  %1679 = vmatmul.mubr.msk.f32.vlgmr.msra.gmra.mxu1 %vm31_vm1, %v1676_v54  ;;  %1682 = vmatmul.mubr.msk.f32.vlgmr.msra.gmra.mxu0 %vm31_vm1, %v839_v55 }
  0x99   :  { %v1012_v58 = vsel %vm195_vm3, %v1009_v57, %v1011_v56  ;;  %v1013_v59 = vsel %vm195_vm3, %v1011_v56, %v1009_v57  ;;  %1088 = vmatprep.mubr.f32.mxu1 %v1726_v1  ;;  %1177 = vmatprep.mubr.f32.mxu0 %v1726_v1 }
  0x9a   :  { %1684 = vmatprep.subr.msk.mxu1 %vm35_vm0, %v1013_v59 }
  0x9b   :  { %1685 = vmatpush1.msk.msra.mxu1 %vm35_vm0, %v1012_v58 }
  0x9c   :  { %v1100_v61 = vpop.permute.xlu1 %1099  ;;  %v1098_v62 = vpop.permute.xlu0 %1097  ;;  %1686 = vmatmul.mubr.msk.f32.vlgmr.msra.gmra.mxu1 %vm31_vm1, %v1683_v60 }
  0x9d   :  { %v1101_v63 = vsel %vm286_vm4, %v1098_v62, %v1100_v61  ;;  %v1102_v0 = vsel %vm286_vm4, %v1100_v61, %v1098_v62  ;;  %1266 = vmatprep.mubr.f32.mxu1 %v1726_v1 }
  0x9e   :  { %1688 = vmatprep.subr.msk.mxu0 %vm35_vm0, %v1102_v0 }
  0x9f   :  { %1689 = vmatpush1.msk.msra.mxu0 %vm35_vm0, %v1101_v63 }
  0xa0   :  { %v1189_v3 = vpop.permute.xlu1 %1188  ;;  %v1187_v4 = vpop.permute.xlu0 %1186  ;;  %1690 = vmatmul.mubr.msk.f32.vlgmr.msra.gmra.mxu0 %vm31_vm1, %v1687_v2 }
  0xa1   :  { %v1190_v5 = vsel %vm377_vm5, %v1187_v4, %v1189_v3  ;;  %v1191_v6 = vsel %vm377_vm5, %v1189_v3, %v1187_v4  ;;  %1355 = vmatprep.mubr.f32.mxu0 %v1726_v1 }
  0xa2   :  { %1692 = vmatprep.subr.msk.mxu1 %vm35_vm0, %v1191_v6 }
  0xa3   :  { %1693 = vmatpush1.msk.msra.mxu1 %vm35_vm0, %v1190_v5 }
  0xa4   :  { %v1278_v8 = vpop.permute.xlu1 %1277  ;;  %v1276_v10 = vpop.permute.xlu0 %1275  ;;  %1694 = vmatmul.mubr.msk.f32.vlgmr.msra.gmra.mxu1 %vm31_vm1, %v1691_v7 }
  0xa5   :  { %v1279_v11 = vsel %vm468_vm6, %v1276_v10, %v1278_v8  ;;  %v1280_v12 = vsel %vm468_vm6, %v1278_v8, %v1276_v10  ;;  %1444 = vmatprep.mubr.f32.mxu1 %v1726_v1 }
  0xa6   :  { %1696 = vmatprep.subr.msk.mxu0 %vm35_vm0, %v1280_v12 }
  0xa7   :  { %1697 = vmatpush1.msk.msra.mxu0 %vm35_vm0, %v1279_v11 }
  0xa8   :  { %v1367_v14 = vpop.permute.xlu1 %1366  ;;  %v1365_v15 = vpop.permute.xlu0 %1364  ;;  %1698 = vmatmul.mubr.msk.f32.vlgmr.msra.gmra.mxu0 %vm31_vm1, %v1695_v13 }
  0xa9   :  { %v1368_v16 = vsel %vm559_vm7, %v1365_v15, %v1367_v14  ;;  %v1369_v17 = vsel %vm559_vm7, %v1367_v14, %v1365_v15  ;;  %1533 = vmatprep.mubr.f32.mxu0 %v1726_v1 }
  0xaa   :  { %1700 = vmatprep.subr.msk.mxu1 %vm35_vm0, %v1369_v17 }
  0xab   :  { %1701 = vmatpush1.msk.msra.mxu1 %vm35_vm0, %v1368_v16 }
  0xac   :  { %v1456_v19 = vpop.permute.xlu1 %1455  ;;  %v1454_v20 = vpop.permute.xlu0 %1453  ;;  %1702 = vmatmul.mubr.msk.f32.vlgmr.msra.gmra.mxu1 %vm31_vm1, %v1699_v18 }
  0xad   :  { %v1457_v21 = vsel %vm650_vm8, %v1454_v20, %v1456_v19  ;;  %v1458_v22 = vsel %vm650_vm8, %v1456_v19, %v1454_v20  ;;  %1622 = vmatprep.mubr.f32.mxu1 %v1726_v1 }
  0xae   :  { %1704 = vmatprep.subr.msk.mxu0 %vm35_vm0, %v1458_v22 }
  0xaf   :  { %1705 = vmatpush1.msk.msra.mxu0 %vm35_vm0, %v1457_v21 }
  0xb0   :  { %v1545_v24 = vpop.permute.xlu1 %1544  ;;  %v1543_v25 = vpop.permute.xlu0 %1542  ;;  %1706 = vmatmul.mubr.msk.f32.vlgmr.msra.gmra.mxu0 %vm31_vm1, %v1703_v23 }
  0xb1   :  { %v1546_v26 = vsel %vm741_vm9, %v1543_v25, %v1545_v24  ;;  %v1547_v27 = vsel %vm741_vm9, %v1545_v24, %v1543_v25 }
  0xb2   :  { %1708 = vmatprep.subr.msk.mxu1 %vm35_vm0, %v1547_v27 }
  0xb3   :  { %1709 = vmatpush1.msk.msra.mxu1 %vm35_vm0, %v1546_v26 }
  0xb4   :  { %1710 = vmatmul.mubr.msk.f32.vlgmr.msra.gmra.mxu1 %vm31_vm1, %v1707_v28 }
  0xbd   :  { %v831_v58 = vpop.permute.xlu0 %830 }
  0xc7   :  { %v186_v1 = vpop.f32.mrf.mxu1 }
  0xc9   :  { %v188_v30 = vpop.f32.mrf.mxu1 }
 0x13c   :  { %v108_v29 = vpop.f32.mrf.mxu0 }
 0x13d   :  { %v187_v31 = vadd.f32 %v186_v1, %v108_v29 }
 0x13e   :  { %v110_v32 = vpop.f32.mrf.mxu0 }
 0x13f   :  { %v189_v33 = vadd.f32 %v188_v30, %v110_v32 }
 0x140   :  { %v275_v34 = vpop.f32.mrf.mxu0  ;;  %v366_v35 = vpop.f32.mrf.mxu1 }
 0x141   :  { %v280_v9 = vadd.f32 %v275_v34, %v187_v31 }
 0x142   :  { %v277_v36 = vpop.f32.mrf.mxu0  ;;  %v368_v37 = vpop.f32.mrf.mxu1 }
 0x143   :  { %v281_v38 = vadd.f32 %v277_v36, %v189_v33  ;;  %v371_v39 = vadd.f32 %v366_v35, %v280_v9 }
 0x144   :  { %v457_v40 = vpop.f32.mrf.mxu0 }
 0x145   :  { %v372_v41 = vadd.f32 %v368_v37, %v281_v38  ;;  %v462_v42 = vadd.f32 %v457_v40, %v371_v39 }
 0x146   :  { %v459_v43 = vpop.f32.mrf.mxu0 }
 0x147   :  { %v463_v44 = vadd.f32 %v459_v43, %v372_v41 }
 0x148   :  { %v548_v45 = vpop.f32.mrf.mxu1 }
 0x149   :  { %v553_v46 = vadd.f32 %v548_v45, %v462_v42 }
 0x14a   :  { %v550_v47 = vpop.f32.mrf.mxu1 }
 0x14b   :  { %v554_v48 = vadd.f32 %v550_v47, %v463_v44 }
 0x14c   :  { %v639_v49 = vpop.f32.mrf.mxu0 }
 0x14d   :  { %v644_v50 = vadd.f32 %v639_v49, %v553_v46 }
 0x14e   :  { %v641_v51 = vpop.f32.mrf.mxu0 }
 0x14f   :  { %v645_v52 = vadd.f32 %v641_v51, %v554_v48 }
 0x150   :  { %v730_v53 = vpop.f32.mrf.mxu1 }
 0x151   :  { %v735_v54 = vadd.f32 %v730_v53, %v644_v50 }
 0x152   :  { %v732_v55 = vpop.f32.mrf.mxu1 }
 0x153   :  { %v736_v56 = vadd.f32 %v732_v55, %v645_v52 }
 0x154   :  { %v821_v57 = vpop.f32.mrf.mxu0 }
 0x155   :  { %v826_v59 = vadd.f32 %v821_v57, %v735_v54 }
 0x156   :  { %v823_v60 = vpop.f32.mrf.mxu0 }
 0x157   :  { %v827_v61 = vadd.f32 %v823_v60, %v736_v56  ;;  %v833_v62 = vadd.f32 %v831_v58, %v826_v59 }
 0x158   :  { %v925_v63 = vpop.f32.mrf.mxu1  ;;  %v1003_v0 = vpop.f32.mrf.mxu0 }
 0x159   :  { %v834_v2 = vadd.f32 %v831_v58, %v827_v61  ;;  %835 = vst [vmem:[%s2012_s3] sm:$0x3f] %v833_v62  ;;  %v1004_v4 = vadd.f32 %v1003_v0, %v925_v63 }
 0x15a   :  { %v927_v3 = vpop.f32.mrf.mxu1  ;;  %v1005_v5 = vpop.f32.mrf.mxu0 }
 0x15b   :  { %836 = vst [vmem:[%s2012_s3 + $0x8] sm:$0x3f] %v834_v2  ;;  %v1006_v7 = vadd.f32 %v1005_v5, %v927_v3 }
 0x15c   :  { %v1090_v6 = vpop.f32.mrf.mxu1 }
 0x15d   :  { %v1095_v8 = vadd.f32 %v1090_v6, %v1004_v4 }
 0x15e   :  { %v1092_v10 = vpop.f32.mrf.mxu1 }
 0x15f   :  { %v1096_v12 = vadd.f32 %v1092_v10, %v1006_v7 }
 0x160   :  { %v1179_v11 = vpop.f32.mrf.mxu0 }
 0x161   :  { %v1184_v13 = vadd.f32 %v1179_v11, %v1095_v8 }
 0x162   :  { %v1181_v14 = vpop.f32.mrf.mxu0 }
 0x163   :  { %v1185_v16 = vadd.f32 %v1181_v14, %v1096_v12 }
 0x164   :  { %v1268_v15 = vpop.f32.mrf.mxu1 }
 0x165   :  { %v1273_v17 = vadd.f32 %v1268_v15, %v1184_v13 }
 0x166   :  { %v1270_v18 = vpop.f32.mrf.mxu1 }
 0x167   :  { %v1274_v20 = vadd.f32 %v1270_v18, %v1185_v16 }
 0x168   :  { %v1357_v19 = vpop.f32.mrf.mxu0 }
 0x169   :  { %v1362_v21 = vadd.f32 %v1357_v19, %v1273_v17 }
 0x16a   :  { %v1359_v22 = vpop.f32.mrf.mxu0 }
 0x16b   :  { %v1363_v24 = vadd.f32 %v1359_v22, %v1274_v20 }
 0x16c   :  { %v1446_v23 = vpop.f32.mrf.mxu1 }
 0x16d   :  { %v1451_v25 = vadd.f32 %v1446_v23, %v1362_v21 }
 0x16e   :  { %v1448_v26 = vpop.f32.mrf.mxu1 }
 0x16f   :  { %v1452_v1 = vadd.f32 %v1448_v26, %v1363_v24 }
 0x170   :  { %v1535_v27 = vpop.f32.mrf.mxu0 }
 0x171   :  { %v1540_v29 = vadd.f32 %v1535_v27, %v1451_v25 }
 0x172   :  { %v1537_v28 = vpop.f32.mrf.mxu0 }
 0x173   :  { %v1541_v31 = vadd.f32 %v1537_v28, %v1452_v1 }
 0x174   :  { %v1624_v30 = vpop.f32.mrf.mxu1 }
 0x175   :  { %v1629_v32 = vadd.f32 %v1624_v30, %v1540_v29 }
 0x176   :  { %v1626_v33 = vpop.f32.mrf.mxu1 }
 0x177   :  { %v1631_v34 = vadd.f32 %v1629_v32, %v831_v58  ;;  %v1630_v35 = vadd.f32 %v1626_v33, %v1541_v31 }
 0x179   :  { %1711 = vst [vmem:[%s2012_s3 + $0x10] sm:$0x3f] %v1631_v34  ;;  %v1632_v9 = vadd.f32 %v1630_v35, %v831_v58 }
 0x17b   :  { %1712 = vst [vmem:[%s2012_s3 + $0x18] sm:$0x3f] %v1632_v9 }

</bundles_post_ra>
